<compile_context>
chip_gen: v7x
topology: tpu7x:2x2x1
jax: 0.10.0
libtpu: 0.0.40
codegen_flags: <defaults>
</compile_context>

<pallas_src>
import jax
import jax.numpy as jnp
from jax.experimental import pallas as pl
from jax.experimental.pallas import tpu as pltpu


def logreg_kernel(x_ref, w_ref, b_ref, o_ref):
    # x_ref: [TILE_B, F] VMEM tile, w_ref: [F, 1] VMEM (resident across steps),
    # b_ref: [1, 1] SMEM scalar, o_ref: [TILE_B, 1] output tile.
    logits = jnp.dot(x_ref[...], w_ref[...], preferred_element_type=jnp.float32)
    logits = logits + b_ref[0, 0]
    o_ref[...] = jax.nn.sigmoid(logits).astype(o_ref.dtype)


def _choose_tile_b(batch, n_features, vmem_budget_bytes=8 * 1024 * 1024):
    """Pick a batch tile: multiple of 8, ~512-2048 rows, double-buffered x fits VMEM."""
    # VMEM lane-pads the feature dim up to a multiple of 128.
    f_pad = max(128, ((n_features + 127) // 128) * 128)
    # Double-buffered x tiles dominate VMEM usage: 2 * TILE_B * f_pad * 4 bytes.
    max_rows = max(8, vmem_budget_bytes // (2 * f_pad * 4))
    tile = min(1024, max_rows)
    b_pad8 = ((batch + 7) // 8) * 8
    tile = min(tile, b_pad8)
    return max(8, (tile // 8) * 8)


def logistic_regression(x, w, b, *, tile_b=None):
    """x: [B, F] f32, w: [F, 1] f32, b: [1, 1] f32 -> [B, 1] f32 = sigmoid(x @ w + b)."""
    B, F = x.shape
    assert w.shape == (F, 1)
    x = jnp.asarray(x, jnp.float32)
    w = jnp.asarray(w, jnp.float32)
    b = jnp.asarray(b, jnp.float32).reshape(1, 1)

    if tile_b is None:
        tile_b = _choose_tile_b(B, F)

    grid_b = pl.cdiv(B, tile_b)
    b_padded = grid_b * tile_b
    if b_padded != B:
        # Zero-pad the tail tile; padded rows just compute sigmoid(bias) and are
        # sliced off below.
        x = jnp.pad(x, ((0, b_padded - B), (0, 0)))

    # TODO(synk): for very large n_features, add a second "arbitrary" reduction grid
    # axis over F with an f32 VMEM accumulator so per-step VMEM stays bounded.
    out = pl.pallas_call(
        logreg_kernel,
        out_shape=jax.ShapeDtypeStruct((b_padded, 1), jnp.float32),
        grid_spec=pltpu.PrefetchScalarGridSpec(
            num_scalar_prefetch=0,
            grid=(grid_b,),
            in_specs=[
                # x: streamed batch tiles (double-buffered / pipelined by Pallas).
                pl.BlockSpec((tile_b, F), lambda i: (i, 0)),
                # w: tiny, constant block index -> resident across grid steps.
                pl.BlockSpec((F, 1), lambda i: (0, 0)),
                # bias: scalar in SMEM, no padded VMEM tile.
                pl.BlockSpec(memory_space=pltpu.MemorySpace.SMEM),
            ],
            out_specs=pl.BlockSpec((tile_b, 1), lambda i: (i, 0)),
        ),
        compiler_params=pltpu.CompilerParams(
            dimension_semantics=("parallel",),
        ),
    )(x, w, b)

    return out[:B]


if __name__ == "__main__":
    key = jax.random.PRNGKey(0)
    kx, kw, kb = jax.random.split(key, 3)

    batch = 20          # not a multiple of the tile -> exercises the padded tail tile
    n_features = 32

    # Deterministic synthetic parameters, mimicking nn.Linear(n_features, 1)
    # (PyTorch weight shape [1, F]; stored transposed as [F, 1]).
    bound = 1.0 / (n_features ** 0.5)
    x = jax.random.normal(kx, (batch, n_features), dtype=jnp.float32)
    w = jax.random.uniform(kw, (n_features, 1), minval=-bound, maxval=bound,
                           dtype=jnp.float32)
    b = jax.random.uniform(kb, (1, 1), minval=-bound, maxval=bound,
                           dtype=jnp.float32)

    # Small tile so the tiny test still runs a multi-step pipelined grid.
    y = logistic_regression(x, w, b, tile_b=8)
    jax.block_until_ready(y)

    # Reference check in plain JAX.
    y_ref = jax.nn.sigmoid(x @ w + b[0, 0])
    assert y.shape == (batch, 1)
    assert jnp.allclose(y, y_ref, atol=1e-5, rtol=1e-5)

    print("KERNEL_OK")
</pallas_src>

<mosaic_0001>
module attributes {stable_mosaic.version = 11 : i64} {
  func.func @logreg_kernel(%arg0: i32, %arg1: memref<8x32xf32, #tpu.memory_space<vmem>>, %arg2: memref<32x1xf32, #tpu.memory_space<vmem>>, %arg3: memref<1x1xf32, #tpu.memory_space<smem>>, %arg4: memref<8x1xf32, #tpu.memory_space<vmem>>) attributes {dimension_semantics = [#tpu.dimension_semantics<parallel>], iteration_bounds = array<i64: 3>, scalar_prefetch = 0 : i64, scratch_operands = 0 : i64, tpu.core_type = #tpu.core_type<tc>, window_params = [{transform_indices = @transform_0, window_bounds = array<i64: 8, 32>}, {pipeline_mode = #tpu.pipeline_mode<synchronous>, transform_indices = @transform_1, window_bounds = array<i64: 32, 1>}, {transform_indices = @transform_2, window_bounds = array<i64: 1, 1>}, {transform_indices = @transform_3, window_bounds = array<i64: 8, 1>}]} {
    %c0 = arith.constant 0 : index
    %c0_0 = arith.constant 0 : index
    %0 = vector.load %arg1[%c0, %c0_0] : memref<8x32xf32, #tpu.memory_space<vmem>>, vector<8x32xf32>
    %c0_1 = arith.constant 0 : index
    %c0_2 = arith.constant 0 : index
    %1 = vector.load %arg2[%c0_1, %c0_2] : memref<32x1xf32, #tpu.memory_space<vmem>>, vector<32x1xf32>
    %cst = arith.constant dense<0.000000e+00> : vector<8x1xf32>
    %2 = tpu.matmul %0, %1, %cst {dimension_numbers = #tpu.dot_dimension_numbers<[1], [0], [0], [1], [0, 0, 1, 1], [], []>} : vector<8x32xf32>, vector<32x1xf32>, vector<8x1xf32> -> vector<8x1xf32>
    %c0_3 = arith.constant 0 : index
    %c0_4 = arith.constant 0 : index
    %3 = memref.load %arg3[%c0_3, %c0_4] : memref<1x1xf32, #tpu.memory_space<smem>>
    %4 = vector.broadcast %3 : f32 to vector<8x1xf32>
    %5 = arith.addf %2, %4 : vector<8x1xf32>
    %6 = arith.negf %5 : vector<8x1xf32>
    %7 = math.exp %6 : vector<8x1xf32>
    %cst_5 = arith.constant 1.000000e+00 : f32
    %8 = vector.broadcast %cst_5 : f32 to vector<8x1xf32>
    %9 = arith.addf %8, %7 : vector<8x1xf32>
    %10 = arith.divf %8, %9 : vector<8x1xf32>
    %c0_6 = arith.constant 0 : index
    %c0_7 = arith.constant 0 : index
    %11 = vector.load %arg4[%c0_6, %c0_7] : memref<8x1xf32, #tpu.memory_space<vmem>>, vector<8x1xf32>
    tpu.vector_store %arg4[%c0_6, %c0_7], %10 {strides = array<i32>} : memref<8x1xf32, #tpu.memory_space<vmem>>, vector<8x1xf32>,
    return
  }
  func.func @transform_0(%arg0: i32) -> (i32, i32) {
    %c0_i32 = arith.constant 0 : i32
    %c0_i32_0 = arith.constant 0 : i32
    return %arg0, %c0_i32 : i32, i32
  }
  func.func @transform_1(%arg0: i32) -> (i32, i32) {
    %c0_i32 = arith.constant 0 : i32
    %c0_i32_0 = arith.constant 0 : i32
    %c0_i32_1 = arith.constant 0 : i32
    return %c0_i32, %c0_i32_0 : i32, i32
  }
  func.func @transform_2(%arg0: i32) -> (i32, i32) {
    %c0_i32 = arith.constant 0 : i32
    %c0_i32_0 = arith.constant 0 : i32
    %c0_i32_1 = arith.constant 0 : i32
    return %c0_i32, %c0_i32_0 : i32, i32
  }
  func.func @transform_3(%arg0: i32) -> (i32, i32) {
    %c0_i32 = arith.constant 0 : i32
    %c0_i32_0 = arith.constant 0 : i32
    return %arg0, %c0_i32 : i32, i32
  }
}

</mosaic_0001>

<bundles_post_ra>
// kernel: tpu_custom_call.1
= control target key start
LH: loop header
LB: loop body
LE: loop exit
PB: predicated region body
PF: predicated region fallthrough
CT: control target
= control target key end

     0   :  { %s391_s14 = smov 0   ;;  %s420_s0 = inlined_call_operand.vmem [shape: f32[24,32], index: 0, kind: input, shape index: {}]   ;;  %s421_s1 = inlined_call_operand.vmem [shape: f32[32,1], index: 1, kind: input, shape index: {}]   ;;  %s422_s2 = inlined_call_operand.<no memory space> [shape: f32[1,1], index: 2, kind: input, shape index: {}]   ;;  %s423_s3 = inlined_call_operand.vmem [shape: f32[24,1], index: 3, kind: output, shape index: {}]  }
   0x1   :  { %8 = sst [smem:[#allocation2]] %s422_s2 }
   0x2 LB: > { %s309_s15 = sadd.s32 4294967295, %s363_s14   ;;  %p313_p0 = scmp.ge.s32.totalorder %s363_s14, 1  ;;  %s363_s14 = sphi %s391_s14, %s14_s14  }
   0x3   : > { %p137_p1 = scmp.lt.s32.totalorder %s363_s14, 4 }
   0x5   : > { %p138_p2 = pnand %p313_p0, %p137_p1 }
   0x6   : > { %v168_v0 = vld [vmem:[%s421_s1] sm:$0xff] (!%p138_p2)  ;;  %v169_v1 = vld [vmem:[%s421_s1 + $0x8] sm:$0xff] (!%p138_p2)  ;;  %v170_v2 = vld [vmem:[%s421_s1 + $0x10] sm:$0xff] (!%p138_p2)  ;;  %v365_v3 = vmov (!%p138_p2), 0.0|0.0   ;;  %vm366_vm0 = vmmov (!%p138_p2), 0   ;;  %v367_v6 = vmov (!%p138_p2), 0.0  }
   0x7   : > { %141 = sbr.rel (%p138_p2) target bundleno = 259 (0x103), region = 32  ;;  %336 = vmatprep.subr.bf16.mxu0 (!%p138_p2), %v365_v3  ;;  %v337_v4 = vpack.c.bf16 (!%p138_p2), %v169_v1, %v168_v0  ;;  %v171_v5 = vld [vmem:[%s421_s1 + $0x18] sm:$0xff] (!%p138_p2)  ;;  %333 = vmatprep.mubr.msk.f32.mxu0 (!%p138_p2), %vm366_vm0, %v367_v6  ;;  %p159_p3 = scmp.lt.s32.totalorder (!%p138_p2), %s309_s15, 2  ;;  %vm174_vm1 = vcmask (!%p138_p2), 261120   ;;  %vm254_vm2 = vcmask (!%p138_p2), 7168  }
   0x8   : > { %v340_v7 = vpack.c.bf16 (!%p138_p2), %v171_v5, %v170_v2  ;;  %s172_s27 = sld [smem:[#allocation2]] (!%p138_p2) }
   0x9   : > { %338 = vmatpush3.bf16.msra.mxu0 (!%p138_p2), %v337_v4 }
   0xa   : > { %339 = vmatprep.subr.bf16.mxu0 (!%p138_p2), %v365_v3 }
   0xd   : > { %341 = vmatpush3.bf16.msra.mxu0 (!%p138_p2), %v340_v7 }
   0xe   : > { %s425_s15 = smov (!%p159_p3, %s309_s15), 2  ;;  %v173_v9 = vstv %s172_s27 }
   0xf   : > { %s314_s23 = sshll.u32 %s425_s15, 3 }
  0x10   : > { %s162_s26 = scalar_lea.vmem %s420_s0, %s314_s23  ;;  %s166_s30 = scalar_lea.vmem %s423_s3, %s314_s23 }
  0x11   : > { %v167_v8 = vld [vmem:[%s162_s26] sm:$0xff] }
  0x12   : > { %334 = vmatmul.mubr.msk.f32.vlgmr.msra.gmra.mrb[0].mxu0 %vm174_vm1, %v167_v8 }
  0xe5   : > { %v244_v10 = vpop.f32.mrb[0].mxu0 }
  0xe6   : > { %v245_v11 = vadd.f32 %v244_v10, %v173_v9  ;;  %v335_v12 = vpop.f32.mrb[1].mxu0 }
  0xe8   : > { %v317_v13 = vmul.f32 -1.442695, %v245_v11 }
  0xea   : > { %353 = vpow2.f32 %v317_v13 }
  0xf4   : > { %v354_v14 = vpop.eup %353 }
  0xf5   : > { %v251_v15 = vadd.f32 1.0, %v354_v14 }
  0xf7   : > { %355 = vrcp.f32 %v251_v15 }
 0x101   : > { %v356_v16 = vpop.eup %355 }
 0x102   : > { %255 = vst.msk [vmem:[%s166_s30] sm:$0xff] %vm254_vm2, %v356_v16 }
 0x103 PF: > { %s14_s14 = sadd.s32 1, %s363_s14  }
 0x104   : > { %p11_p4 = scmp.ge.s32.totalorder %s14_s14, 5  }
 0x106   :  { %13 = sbr.rel (!%p11_p4) target bundleno = 2 (0x2), region = 62 }

</bundles_post_ra>
